<compile_context>
chip_gen: v7x
topology: tpu7x:2x2x1
jax: 0.10.0
libtpu: 0.0.40
codegen_flags: <defaults>
</compile_context>

<pallas_src>
import jax
import jax.numpy as jnp
from jax.experimental import pallas as pl
from jax.experimental.pallas import tpu as pltpu

ROW_ALIGN = 16      # bf16 packs 16 rows per vreg sublane group
TB_MAX = 1024       # measured ~85% of HBM roofline at 512-1024 row tiles


def _round_up(n, m):
    return ((n + m - 1) // m) * m


# ----------------------------- Pallas kernel --------------------------------
def _make_vae_kernel(n_inputs, latent):
    """Kernel factory: n_inputs obs groups, 2-layer ReLU trunk, fused head."""

    def kernel(*refs):
        xs = refs[:n_inputs]                      # [TB, d_k]        f32
        w1s = refs[n_inputs:2 * n_inputs]         # [d_k, H]         bf16
        (b1_ref, w2_ref, b2_ref, wh_ref, bh_ref,
         mu_ref, lv_ref) = refs[2 * n_inputs:]

        # Trunk layer 1: h1 = sum_k x_k @ w1_k + b1  (concat-free)
        h1 = b1_ref[...]
        for x_ref, w_ref in zip(xs, w1s):
            h1 = h1 + jnp.dot(x_ref[...].astype(jnp.bfloat16), w_ref[...],
                              preferred_element_type=jnp.float32)
        h1 = jnp.maximum(h1, 0.0)

        # Trunk layer 2
        h2 = jnp.dot(h1.astype(jnp.bfloat16), w2_ref[...],
                     preferred_element_type=jnp.float32) + b2_ref[...]
        h2 = jnp.maximum(h2, 0.0)

        # Fused (mu | logvar) head: one MXU push, two narrow stores.
        head = jnp.dot(h2.astype(jnp.bfloat16), wh_ref[...],
                       preferred_element_type=jnp.float32) + bh_ref[...]
        mu_ref[...] = head[:, :latent].astype(mu_ref.dtype)
        lv_ref[...] = head[:, latent:2 * latent].astype(lv_ref.dtype)

    return kernel


# ------------------------------ Wrapper --------------------------------------
def vae_module_forward(input_dict, params):
    """Pallas implementation of VaeModule.forward.

    input_dict : dict of [B, d_i] float arrays (obs groups)
    params     : dict with trunk / head weights (see init_params, all f32)
    returns    : {'mu': [B, latent], 'logvar': [B, latent]} (f32)
    """
    keys = sorted(input_dict.keys())
    xs = [input_dict[k].astype(jnp.float32) for k in keys]
    dims = [x.shape[-1] for x in xs]
    B = xs[0].shape[0]

    H = params["w2"].shape[0]
    latent = params["w_mu"].shape[1]
    head_cols = 2 * latent
    in_dim = sum(dims)

    # ---- parameter prep (plain JAX; constant-folds under jit) ----------------
    w1 = params["w1"].astype(jnp.bfloat16)
    w1_chunks, off = [], 0
    for d in dims:                               # row-split of w1 per obs group
        w1_chunks.append(w1[off:off + d, :])
        off += d
    w2 = params["w2"].astype(jnp.bfloat16)
    wh = jnp.concatenate([params["w_mu"], params["w_lv"]],
                         axis=1).astype(jnp.bfloat16)          # [H, 2*latent]
    b1 = params["b1"].astype(jnp.float32)
    b2 = params["b2"].astype(jnp.float32)
    bh = jnp.concatenate([params["b_mu"], params["b_lv"]],
                         axis=1).astype(jnp.float32)           # [1, 2*latent]

    # ---- batch tiling: pad-aware, 16-row aligned, >=2 tiles for v7x ----------
    n_tiles = max(1, pl.cdiv(B, TB_MAX))
    if n_tiles == 1 and B >= 2 * ROW_ALIGN:
        n_tiles = 2                              # give v7x's 2nd TC work
    if n_tiles > 1 and n_tiles % 2:
        n_tiles += 1                             # shard evenly across 2 TCs
    TB = _round_up(pl.cdiv(B, n_tiles), ROW_ALIGN)
    B_pad = TB * n_tiles
    if B_pad != B:
        xs = [jnp.pad(x, ((0, B_pad - B), (0, 0))) for x in xs]

    operands = (*xs, *w1_chunks, b1, w2, b2, wh, bh)
    flops = 2 * B_pad * (in_dim * H + H * H + H * head_cols)
    bytes_accessed = (sum(int(o.size) * o.dtype.itemsize for o in operands)
                      + 2 * B_pad * latent * 4)
    cost = pl.CostEstimate(flops=flops, transcendentals=0,
                           bytes_accessed=bytes_accessed)

    def x_spec(d):
        return pl.BlockSpec((TB, d), lambda i: (i, 0))

    def w_spec(w):
        return pl.BlockSpec(w.shape, lambda i: (0, 0))   # VMEM-resident weights

    in_specs = ([x_spec(d) for d in dims]
                + [w_spec(w) for w in w1_chunks]
                + [w_spec(b1), w_spec(w2), w_spec(b2), w_spec(wh), w_spec(bh)])

    out_spec = pl.BlockSpec((TB, latent), lambda i: (i, 0))

    out_mu, out_lv = pl.pallas_call(
        _make_vae_kernel(len(xs), latent),
        out_shape=(jax.ShapeDtypeStruct((B_pad, latent), jnp.float32),
                   jax.ShapeDtypeStruct((B_pad, latent), jnp.float32)),
        grid=(n_tiles,),
        in_specs=in_specs,
        out_specs=(out_spec, out_spec),
        compiler_params=pltpu.CompilerParams(
            dimension_semantics=("parallel",)),
        cost_estimate=cost,
    )(*operands)

    return {"mu": out_mu[:B], "logvar": out_lv[:B]}


# ------------------------- Deterministic parameters ---------------------------
def init_params(key, in_dim, hidden_dim, latent_dim):
    ks = jax.random.split(key, 8)
    scale = lambda fan_in: 1.0 / jnp.sqrt(jnp.float32(fan_in))
    return {
        "w1": jax.random.uniform(ks[0], (in_dim, hidden_dim), jnp.float32,
                                 -scale(in_dim), scale(in_dim)),
        "b1": jax.random.uniform(ks[1], (1, hidden_dim), jnp.float32,
                                 -scale(in_dim), scale(in_dim)),
        "w2": jax.random.uniform(ks[2], (hidden_dim, hidden_dim), jnp.float32,
                                 -scale(hidden_dim), scale(hidden_dim)),
        "b2": jax.random.uniform(ks[3], (1, hidden_dim), jnp.float32,
                                 -scale(hidden_dim), scale(hidden_dim)),
        "w_mu": jax.random.uniform(ks[4], (hidden_dim, latent_dim), jnp.float32,
                                   -scale(hidden_dim), scale(hidden_dim)),
        "b_mu": jax.random.uniform(ks[5], (1, latent_dim), jnp.float32,
                                   -scale(hidden_dim), scale(hidden_dim)),
        "w_lv": jax.random.uniform(ks[6], (hidden_dim, latent_dim), jnp.float32,
                                   -scale(hidden_dim), scale(hidden_dim)),
        "b_lv": jax.random.uniform(ks[7], (1, latent_dim), jnp.float32,
                                   -scale(hidden_dim), scale(hidden_dim)),
    }


def reference_forward(input_dict, params):
    x = jnp.concatenate([input_dict[k] for k in sorted(input_dict.keys())],
                        axis=-1).astype(jnp.float32)
    h1 = jnp.maximum(x @ params["w1"] + params["b1"], 0.0)
    h2 = jnp.maximum(h1 @ params["w2"] + params["b2"], 0.0)
    return {
        "mu": h2 @ params["w_mu"] + params["b_mu"],
        "logvar": h2 @ params["w_lv"] + params["b_lv"],
    }


# ---------------------------------- Main --------------------------------------
if __name__ == "__main__":
    key = jax.random.PRNGKey(0)
    k_obs, k_tgt, k_params = jax.random.split(key, 3)

    B = 8
    obs_dim = 24
    target_dim = 8
    in_dim = obs_dim + target_dim   # 32
    hidden_dim = 64
    latent_dim = 16

    input_dict = {
        "obs": jax.random.normal(k_obs, (B, obs_dim), jnp.float32),
        "masked_mimic_target_poses": jax.random.normal(k_tgt, (B, target_dim),
                                                       jnp.float32),
    }

    params = init_params(k_params, in_dim, hidden_dim, latent_dim)

    out = vae_module_forward(input_dict, params)
    jax.block_until_ready(out)

    ref = reference_forward(input_dict, params)
    assert out["mu"].shape == (B, latent_dim)
    assert out["logvar"].shape == (B, latent_dim)
    # bf16 MXU operands (f32 accumulation) -> relaxed tolerance vs. f32 reference
    # TODO(synk): if downstream exp(logvar) needs tighter precision, switch the
    # matmul operands back to f32 (trivial: drop the .astype(bf16) casts).
    assert jnp.allclose(out["mu"], ref["mu"], atol=3e-2, rtol=3e-2)
    assert jnp.allclose(out["logvar"], ref["logvar"], atol=3e-2, rtol=3e-2)

    print("KERNEL_OK")
</pallas_src>

<mosaic_0001>
module attributes {stable_mosaic.version = 11 : i64} {
  func.func @kernel(%arg0: i32, %arg1: memref<16x8xf32, #tpu.memory_space<vmem>>, %arg2: memref<16x24xf32, #tpu.memory_space<vmem>>, %arg3: memref<8x64xbf16, #tpu.memory_space<vmem>>, %arg4: memref<24x64xbf16, #tpu.memory_space<vmem>>, %arg5: memref<1x64xf32, #tpu.memory_space<vmem>>, %arg6: memref<64x64xbf16, #tpu.memory_space<vmem>>, %arg7: memref<1x64xf32, #tpu.memory_space<vmem>>, %arg8: memref<64x32xbf16, #tpu.memory_space<vmem>>, %arg9: memref<1x32xf32, #tpu.memory_space<vmem>>, %arg10: memref<16x16xf32, #tpu.memory_space<vmem>>, %arg11: memref<16x16xf32, #tpu.memory_space<vmem>>) attributes {dimension_semantics = [#tpu.dimension_semantics<parallel>], iteration_bounds = array<i64: 1>, scalar_prefetch = 0 : i64, scratch_operands = 0 : i64, tpu.core_type = #tpu.core_type<tc>, window_params = [{transform_indices = @transform_0, window_bounds = array<i64: 16, 8>}, {transform_indices = @transform_1, window_bounds = array<i64: 16, 24>}, {pipeline_mode = #tpu.pipeline_mode<synchronous>, transform_indices = @transform_2, window_bounds = array<i64: 8, 64>}, {pipeline_mode = #tpu.pipeline_mode<synchronous>, transform_indices = @transform_3, window_bounds = array<i64: 24, 64>}, {pipeline_mode = #tpu.pipeline_mode<synchronous>, transform_indices = @transform_4, window_bounds = array<i64: 1, 64>}, {pipeline_mode = #tpu.pipeline_mode<synchronous>, transform_indices = @transform_5, window_bounds = array<i64: 64, 64>}, {pipeline_mode = #tpu.pipeline_mode<synchronous>, transform_indices = @transform_6, window_bounds = array<i64: 1, 64>}, {pipeline_mode = #tpu.pipeline_mode<synchronous>, transform_indices = @transform_7, window_bounds = array<i64: 64, 32>}, {pipeline_mode = #tpu.pipeline_mode<synchronous>, transform_indices = @transform_8, window_bounds = array<i64: 1, 32>}, {transform_indices = @transform_9, window_bounds = array<i64: 16, 16>}, {transform_indices = @transform_10, window_bounds = array<i64: 16, 16>}]} {
    %c0 = arith.constant 0 : index
    %c0_0 = arith.constant 0 : index
    %0 = vector.load %arg5[%c0, %c0_0] : memref<1x64xf32, #tpu.memory_space<vmem>>, vector<1x64xf32>
    %c0_1 = arith.constant 0 : index
    %c0_2 = arith.constant 0 : index
    %1 = vector.load %arg1[%c0_1, %c0_2] : memref<16x8xf32, #tpu.memory_space<vmem>>, vector<16x8xf32>
    %2 = arith.truncf %1 : vector<16x8xf32> to vector<16x8xbf16>
    %c0_3 = arith.constant 0 : index
    %c0_4 = arith.constant 0 : index
    %3 = vector.load %arg3[%c0_3, %c0_4] : memref<8x64xbf16, #tpu.memory_space<vmem>>, vector<8x64xbf16>
    %cst = arith.constant dense<0.000000e+00> : vector<16x64xf32>
    %4 = tpu.matmul %2, %3, %cst {dimension_numbers = #tpu.dot_dimension_numbers<[1], [0], [0], [1], [0, 0, 1, 1], [], []>} : vector<16x8xbf16>, vector<8x64xbf16>, vector<16x64xf32> -> vector<16x64xf32>
    %5 = vector.broadcast %0 : vector<1x64xf32> to vector<16x64xf32>
    %6 = arith.addf %5, %4 : vector<16x64xf32>
    %c0_5 = arith.constant 0 : index
    %c0_6 = arith.constant 0 : index
    %7 = vector.load %arg2[%c0_5, %c0_6] : memref<16x24xf32, #tpu.memory_space<vmem>>, vector<16x24xf32>
    %8 = arith.truncf %7 : vector<16x24xf32> to vector<16x24xbf16>
    %c0_7 = arith.constant 0 : index
    %c0_8 = arith.constant 0 : index
    %9 = vector.load %arg4[%c0_7, %c0_8] : memref<24x64xbf16, #tpu.memory_space<vmem>>, vector<24x64xbf16>
    %cst_9 = arith.constant dense<0.000000e+00> : vector<16x64xf32>
    %10 = tpu.matmul %8, %9, %cst_9 {dimension_numbers = #tpu.dot_dimension_numbers<[1], [0], [0], [1], [0, 0, 1, 1], [], []>} : vector<16x24xbf16>, vector<24x64xbf16>, vector<16x64xf32> -> vector<16x64xf32>
    %11 = arith.addf %6, %10 : vector<16x64xf32>
    %cst_10 = arith.constant 0.000000e+00 : f32
    %12 = vector.broadcast %cst_10 : f32 to vector<16x64xf32>
    %13 = arith.maximumf %11, %12 : vector<16x64xf32>
    %14 = arith.truncf %13 : vector<16x64xf32> to vector<16x64xbf16>
    %c0_11 = arith.constant 0 : index
    %c0_12 = arith.constant 0 : index
    %15 = vector.load %arg6[%c0_11, %c0_12] : memref<64x64xbf16, #tpu.memory_space<vmem>>, vector<64x64xbf16>
    %cst_13 = arith.constant dense<0.000000e+00> : vector<16x64xf32>
    %16 = tpu.matmul %14, %15, %cst_13 {dimension_numbers = #tpu.dot_dimension_numbers<[1], [0], [0], [1], [0, 0, 1, 1], [], []>} : vector<16x64xbf16>, vector<64x64xbf16>, vector<16x64xf32> -> vector<16x64xf32>
    %c0_14 = arith.constant 0 : index
    %c0_15 = arith.constant 0 : index
    %17 = vector.load %arg7[%c0_14, %c0_15] : memref<1x64xf32, #tpu.memory_space<vmem>>, vector<1x64xf32>
    %18 = vector.broadcast %17 : vector<1x64xf32> to vector<16x64xf32>
    %19 = arith.addf %16, %18 : vector<16x64xf32>
    %cst_16 = arith.constant 0.000000e+00 : f32
    %20 = vector.broadcast %cst_16 : f32 to vector<16x64xf32>
    %21 = arith.maximumf %19, %20 : vector<16x64xf32>
    %22 = arith.truncf %21 : vector<16x64xf32> to vector<16x64xbf16>
    %c0_17 = arith.constant 0 : index
    %c0_18 = arith.constant 0 : index
    %23 = vector.load %arg8[%c0_17, %c0_18] : memref<64x32xbf16, #tpu.memory_space<vmem>>, vector<64x32xbf16>
    %cst_19 = arith.constant dense<0.000000e+00> : vector<16x32xf32>
    %24 = tpu.matmul %22, %23, %cst_19 {dimension_numbers = #tpu.dot_dimension_numbers<[1], [0], [0], [1], [0, 0, 1, 1], [], []>} : vector<16x64xbf16>, vector<64x32xbf16>, vector<16x32xf32> -> vector<16x32xf32>
    %c0_20 = arith.constant 0 : index
    %c0_21 = arith.constant 0 : index
    %25 = vector.load %arg9[%c0_20, %c0_21] : memref<1x32xf32, #tpu.memory_space<vmem>>, vector<1x32xf32>
    %26 = vector.broadcast %25 : vector<1x32xf32> to vector<16x32xf32>
    %27 = arith.addf %24, %26 : vector<16x32xf32>
    %28 = vector.extract_strided_slice %27 {offsets = [0, 0], sizes = [16, 16], strides = [1, 1]} : vector<16x32xf32> to vector<16x16xf32>
    %c0_22 = arith.constant 0 : index
    %c0_23 = arith.constant 0 : index
    %29 = vector.load %arg10[%c0_22, %c0_23] : memref<16x16xf32, #tpu.memory_space<vmem>>, vector<16x16xf32>
    tpu.vector_store %arg10[%c0_22, %c0_23], %28 {strides = array<i32>} : memref<16x16xf32, #tpu.memory_space<vmem>>, vector<16x16xf32>,
    %30 = vector.extract_strided_slice %27 {offsets = [0, 16], sizes = [16, 16], strides = [1, 1]} : vector<16x32xf32> to vector<16x16xf32>
    %c0_24 = arith.constant 0 : index
    %c0_25 = arith.constant 0 : index
    %31 = vector.load %arg11[%c0_24, %c0_25] : memref<16x16xf32, #tpu.memory_space<vmem>>, vector<16x16xf32>
    tpu.vector_store %arg11[%c0_24, %c0_25], %30 {strides = array<i32>} : memref<16x16xf32, #tpu.memory_space<vmem>>, vector<16x16xf32>,
    return
  }
  func.func @transform_0(%arg0: i32) -> (i32, i32) {
    %c0_i32 = arith.constant 0 : i32
    %c0_i32_0 = arith.constant 0 : i32
    return %arg0, %c0_i32 : i32, i32
  }
  func.func @transform_1(%arg0: i32) -> (i32, i32) {
    %c0_i32 = arith.constant 0 : i32
    %c0_i32_0 = arith.constant 0 : i32
    return %arg0, %c0_i32 : i32, i32
  }
  func.func @transform_2(%arg0: i32) -> (i32, i32) {
    %c0_i32 = arith.constant 0 : i32
    %c0_i32_0 = arith.constant 0 : i32
    %c0_i32_1 = arith.constant 0 : i32
    return %c0_i32, %c0_i32_0 : i32, i32
  }
  func.func @transform_3(%arg0: i32) -> (i32, i32) {
    %c0_i32 = arith.constant 0 : i32
    %c0_i32_0 = arith.constant 0 : i32
    %c0_i32_1 = arith.constant 0 : i32
    return %c0_i32, %c0_i32_0 : i32, i32
  }
  func.func @transform_4(%arg0: i32) -> (i32, i32) {
    %c0_i32 = arith.constant 0 : i32
    %c0_i32_0 = arith.constant 0 : i32
    %c0_i32_1 = arith.constant 0 : i32
    return %c0_i32, %c0_i32_0 : i32, i32
  }
  func.func @transform_5(%arg0: i32) -> (i32, i32) {
    %c0_i32 = arith.constant 0 : i32
    %c0_i32_0 = arith.constant 0 : i32
    %c0_i32_1 = arith.constant 0 : i32
    return %c0_i32, %c0_i32_0 : i32, i32
  }
  func.func @transform_6(%arg0: i32) -> (i32, i32) {
    %c0_i32 = arith.constant 0 : i32
    %c0_i32_0 = arith.constant 0 : i32
    %c0_i32_1 = arith.constant 0 : i32
    return %c0_i32, %c0_i32_0 : i32, i32
  }
  func.func @transform_7(%arg0: i32) -> (i32, i32) {
    %c0_i32 = arith.constant 0 : i32
    %c0_i32_0 = arith.constant 0 : i32
    %c0_i32_1 = arith.constant 0 : i32
    return %c0_i32, %c0_i32_0 : i32, i32
  }
  func.func @transform_8(%arg0: i32) -> (i32, i32) {
    %c0_i32 = arith.constant 0 : i32
    %c0_i32_0 = arith.constant 0 : i32
    %c0_i32_1 = arith.constant 0 : i32
    return %c0_i32, %c0_i32_0 : i32, i32
  }
  func.func @transform_9(%arg0: i32) -> (i32, i32) {
    %c0_i32 = arith.constant 0 : i32
    %c0_i32_0 = arith.constant 0 : i32
    return %arg0, %c0_i32 : i32, i32
  }
  func.func @transform_10(%arg0: i32) -> (i32, i32) {
    %c0_i32 = arith.constant 0 : i32
    %c0_i32_0 = arith.constant 0 : i32
    return %arg0, %c0_i32 : i32, i32
  }
}

</mosaic_0001>

<bundles_post_ra>
// kernel: tpu_custom_call.1
= control target key start
LH: loop header
LB: loop body
LE: loop exit
PB: predicated region body
PF: predicated region fallthrough
CT: control target
= control target key end

     0   :  { %16 = vsyncpa [#allocation3], 0  ;;  %s734_s0 = inlined_call_operand.vmem [shape: f32[16,8], index: 0, kind: input, shape index: {}]   ;;  %s735_s1 = inlined_call_operand.vmem [shape: f32[16,24], index: 1, kind: input, shape index: {}]   ;;  %s736_s2 = inlined_call_operand.hbm [shape: bf16[8,64], index: 2, kind: input, shape index: {}]   ;;  %s737_s3 = inlined_call_operand.vmem [shape: bf16[24,64], index: 3, kind: input, shape index: {}]   ;;  %s738_s4 = inlined_call_operand.vmem [shape: f32[1,64], index: 4, kind: input, shape index: {}]   ;;  %s739_s5 = inlined_call_operand.vmem [shape: bf16[64,64], index: 5, kind: input, shape index: {}]   ;;  %s740_s6 = inlined_call_operand.vmem [shape: f32[1,64], index: 6, kind: input, shape index: {}]   ;;  %s741_s7 = inlined_call_operand.vmem [shape: bf16[64,32], index: 7, kind: input, shape index: {}]   ;;  %s742_s8 = inlined_call_operand.vmem [shape: f32[1,32], index: 8, kind: input, shape index: {}]   ;;  %s743_s9 = inlined_call_operand.hbm [shape: f32[16,16], index: 9, kind: output, shape index: {0}]   ;;  %s744_s10 = inlined_call_operand.hbm [shape: f32[16,16], index: 10, kind: output, shape index: {1}]  }
   0x1   :  { %17 = vsyncpa [#allocation4], 0 }
   0x2   :  { %18 = vsyncpa [#allocation7], 0  ;;  %s559_s13 = smov [#allocation2]   ;;  %s487_s17 = scalar_lea.hbm %s736_s2, 64 }
   0x3   :  { %s29_s14 = sshll.u32 %s559_s13, 4  ;;  %p488_p0 = scmp.ne.s32.totalorder %s736_s2, %s487_s17  ;;  %s30_s14 = int_to_ptr.vmem [resolvable:$true] %s29_s14 }
   0x4   :  { %p491_p1 = scmp.lt.u32.totalorder %s487_s17, %s736_s2 }
   0x6   :  { %p493_p2 = pnand %p491_p1, %p488_p0 }
   0x8   :  { %496 = shalt.err (!%p493_p2)
}
   0x9   :  { %s497_s22 = scalar_lea.vmem %s30_s14, 64  ;;  %p502_p4 = scmp.lt.s32.totalorder %s30_s14, %s30_s14 }
   0xa   :  { %p498_p3 = scmp.ne.s32.totalorder %s30_s14, %s497_s22  ;;  %p503_p5 = scmp.lt.s32.totalorder %s497_s22, %s497_s22 }
   0xc   :  { %p504_p6 = por %p503_p5, %p502_p4 }
   0xe   :  { %p505_p7 = pnand %p504_p6, %p498_p3 }
  0x10   :  { %508 = shalt.err (!%p505_p7)
}
  0x11   :  { %32 = dma.hbm_to_vmem [thread:$0]  %s736_s2, 64, %s30_s14, [#allocation3]  }
  0x12   :  { %553 = dma.done.wait [#allocation3], 64  }
  0x13   :  { %554 = vsyncadd [#allocation3], 4294967232  ;;  %v560_v0 = vmov 0.0   ;;  %vm561_vm0 = vmmov 0   ;;  %vm58_vm1 = vcmask 1043456   ;;  %v477_v3 = vld [vmem:[%s737_s3] sm:$0xff]  }
  0x14   :  { %427 = vmatprep.subr.bf16.mxu1 %v560_v0  ;;  %433 = vmatprep.subr.bf16.mxu0 %v560_v0  ;;  %v53_v1 = vld [vmem:[#allocation2] sm:$0xf]  ;;  %v50_v4 = vld [vmem:[%s734_s0] sm:$0xff]  ;;  %v51_v5 = vld [vmem:[%s734_s0 + $0x8] sm:$0xff]  ;;  %vm54_vm2 = vcmask 64512   ;;  %vm126_vm3 = vcmask 195584  }
  0x15   :  { %429 = vmatprep.mubr.msk.bf16.mxu1 %vm561_vm0, %v560_v0  ;;  %437 = vmatprep.mubr.msk.bf16.mxu0 %vm561_vm0, %v560_v0  ;;  %v60_v2 = vsel %vm58_vm1, %v53_v1, 0  ;;  %v52_v6 = vpack.c.bf16 %v51_v5, %v50_v4  ;;  %v478_v7 = vld [vmem:[%s737_s3 + $0x8] ss:$0 sps:$4 sm:$0xff]   ;;  %v111_v8 = vld [vmem:[%s735_s1] sm:$0xff]  ;;  %v481_v14 = vld [vmem:[%s739_s5 + $0x10] sm:$0xff]   ;;  %vm218_vm4 = vcmask 523264  }
  0x16   :  { %428 = vmatpush3.bf16.msra.mxu1 %v60_v2  ;;  %434 = vmatpush3.bf16.msra.mxu0 %v477_v3  ;;  %v112_v9 = vld [vmem:[%s735_s1 + $0x8] sm:$0xff]  ;;  %v131_v10 = vsel %vm58_vm1, %v478_v7, 0  ;;  %v479_v11 = vld [vmem:[%s739_s5] sm:$0xff]   ;;  %v482_v15 = vld [vmem:[%s739_s5 + $0x18] sm:$0xff]   ;;  %vm349_vm5 = vcmask 130048  }
  0x17   :  { %441 = vmatprep.subr.bf16.mxu1 %v560_v0  ;;  %435 = vmatprep.subr.bf16.mxu0 %v560_v0  ;;  %v113_v12 = vpack.c.bf16 %v112_v9, %v111_v8  ;;  %v480_v13 = vld [vmem:[%s739_s5 + $0x8] sm:$0xff]   ;;  %v483_v16 = vld [vmem:[%s741_s7] sm:$0xff]   ;;  %v485_v34 = vld [vmem:[%s741_s7 + $0x10] sm:$0xff]  }
  0x18   :  { %v484_v17 = vld [vmem:[%s741_s7 + $0x8] sm:$0xff]   ;;  %v396_v18 = vld [vmem:[%s738_s4] ss:$0 sm:$0xff]  ;;  %v486_v35 = vld [vmem:[%s741_s7 + $0x18] sm:$0xff]   ;;  %s562_s7 = smov [#allocation5]  }
  0x19   :  { %430 = vmatmul.mubr.msk.bf16.vlgmr.msra.gmra.mrb[0].mxu1 %vm54_vm2, %v52_v6  ;;  %v400_v36 = vld [vmem:[%s740_s6] ss:$0 sm:$0xff]  ;;  %s367_s12 = sshll.u32 %s562_s7, 4  ;;  %s563_s6 = smov 112   ;;  %s368_s12 = int_to_ptr.vmem [resolvable:$true] %s367_s12 }
  0x1a   :  { %442 = vmatpush3.bf16.msra.mxu1 %v479_v11  ;;  %449 = vmatprep.mubr.msk.bf16.mxu1 %vm561_vm0, %v560_v0  ;;  %v406_v46 = vld [vmem:[%s742_s8] ss:$0 sm:$0xff]  ;;  %s509_s13 = scalar_lea.vmem %s368_s12, 256  ;;  %p514_p9 = scmp.lt.s32.totalorder %s368_s12, %s368_s12 }
  0x1b   :  { %436 = vmatpush3.bf16.msra.mxu0 %v131_v10  ;;  %443 = vmatprep.subr.bf16.mxu1 %v560_v0  ;;  %p510_p8 = scmp.ne.s32.totalorder %s368_s12, %s509_s13  ;;  %p515_p10 = scmp.lt.s32.totalorder %s509_s13, %s509_s13 }
  0x1c   :  { %453 = vmatprep.subr.bf16.mxu0 %v560_v0 }
  0x1d   :  { %p516_p11 = por %p515_p10, %p514_p9 }
  0x1e   :  { %438 = vmatmul.mubr.msk.bf16.vlgmr.msra.gmra.mrb[0].mxu0 %vm126_vm3, %v113_v12  ;;  %444 = vmatpush3.bf16.msra.mxu1 %v480_v13 }
  0x1f   :  { %461 = vmatprep.mubr.msk.bf16.mxu0 %vm561_vm0, %v560_v0  ;;  %445 = vmatprep.subr.bf16.mxu1 %v560_v0  ;;  %p517_p12 = pnand %p516_p11, %p510_p8 }
  0x20   :  { %454 = vmatpush3.bf16.msra.mxu0 %v483_v16 }
  0x21   :  { %455 = vmatprep.subr.bf16.mxu0 %v560_v0 }
  0x22   :  { %446 = vmatpush3.bf16.msra.mxu1 %v481_v14 }
  0x23   :  { %447 = vmatprep.subr.bf16.mxu1 %v560_v0 }
  0x24   :  { %456 = vmatpush3.bf16.msra.mxu0 %v484_v17 }
  0x25   :  { %457 = vmatprep.subr.bf16.mxu0 %v560_v0 }
  0x26   :  { %448 = vmatpush3.bf16.msra.mxu1 %v482_v15 }
  0x28   :  { %458 = vmatpush3.bf16.msra.mxu0 %v485_v34 }
  0x29   :  { %459 = vmatprep.subr.bf16.mxu0 %v560_v0 }
  0x2c   :  { %460 = vmatpush3.bf16.msra.mxu0 %v486_v35 }
  0xec   :  { %v96_v19 = vpop.f32.mrb[0].mxu1 }
  0xed   :  { %v431_v20 = vpop.f32.mrb[1].mxu1  ;;  %v109_v21 = vadd.f32 %v396_v18, %v96_v19 }
  0xee   :  { %v99_v22 = vpop.f32.mrb[2].mxu1 }
  0xef   :  { %v432_v23 = vpop.f32.mrb[3].mxu1  ;;  %v110_v25 = vadd.f32 %v396_v18, %v99_v22 }
  0xf1   :  { %v167_v24 = vpop.f32.mrb[0].mxu0 }
  0xf2   :  { %v174_v26 = vadd.f32 %v167_v24, %v109_v21  ;;  %v439_v27 = vpop.f32.mrb[1].mxu0 }
  0xf3   :  { %v170_v28 = vpop.f32.mrb[2].mxu0 }
  0xf4   :  { %v175_v29 = vadd.f32 %v170_v28, %v110_v25  ;;  %v440_v30 = vpop.f32.mrb[3].mxu0  ;;  %v176_v31 = vmax.f32 %v174_v26, 0.0 }
  0xf6   :  { %v177_v32 = vmax.f32 %v175_v29, 0.0 }
  0xf8   :  { %v178_v33 = vpack.c.bf16 %v177_v32, %v176_v31 }
  0xfa   :  { %450 = vmatmul.mubr.msk.bf16.vlgmr.msra.gmra.mrb[4].mxu1 %vm218_vm4, %v178_v33 }
 0x1cd   :  { %v256_v37 = vpop.f32.mrb[4].mxu1 }
 0x1ce   :  { %v257_v38 = vadd.f32 %v400_v36, %v256_v37  ;;  %v451_v39 = vpop.f32.mrb[5].mxu1 }
 0x1cf   :  { %v259_v40 = vpop.f32.mrb[6].mxu1 }
 0x1d0   :  { %v260_v41 = vadd.f32 %v400_v36, %v259_v40  ;;  %v452_v42 = vpop.f32.mrb[7].mxu1  ;;  %v263_v43 = vmax.f32 %v257_v38, 0.0 }
 0x1d2   :  { %v264_v44 = vmax.f32 %v260_v41, 0.0 }
 0x1d4   :  { %v265_v45 = vpack.c.bf16 %v264_v44, %v263_v43 }
 0x1d6   :  { %462 = vmatmul.mubr.msk.bf16.vlgmr.msra.gmra.mrb[4].mxu0 %vm218_vm4, %v265_v45 }
 0x2a9   :  { %v342_v47 = vpop.f32.mrb[4].mxu0 }
 0x2aa   :  { %v343_v48 = vadd.f32 %v406_v46, %v342_v47  ;;  %v463_v49 = vpop.f32.mrb[5].mxu0 }
 0x2ab   :  { %v345_v50 = vpop.f32.mrb[6].mxu0 }
 0x2ac   :  { %350 = vst.msk [vmem:[#allocation5] sm:$0xff] %vm349_vm5, %v343_v48  ;;  %v346_v51 = vadd.f32 %v406_v46, %v345_v50  ;;  %354 = vrot.lane.b32.xlu0 %v343_v48, %s563_s6  ;;  %v464_v52 = vpop.f32.mrb[7].mxu0 }
 0x2ae   :  { %351 = vst.msk [vmem:[#allocation5 + $0x8] sm:$0xff] %vm349_vm5, %v346_v51 }
 0x2af   :  { %520 = shalt.err (!%p517_p12)
}
 0x2b0   :  { %s521_s15 = scalar_lea.hbm %s743_s9, 256 }
 0x2b1   :  { %p522_p13 = scmp.ne.s32.totalorder %s743_s9, %s521_s15  ;;  %p525_p0 = scmp.lt.u32.totalorder %s521_s15, %s743_s9 }
 0x2b3   :  { %p527_p1 = pnand %p525_p0, %p522_p13 }
 0x2b5   :  { %530 = shalt.err (!%p527_p1)
}
 0x2b6   :  { %s564_s17 = smov 128   ;;  %s565_s18 = smov 8   ;;  %356 = vrot.lane.b32.xlu0 %v346_v51, %s563_s6 }
 0x2b7   :  { %373 = dma.vmem_to_hbm [thread:$0]  %s368_s12, 256, %s743_s9, [#allocation4], %s564_s17, %s564_s17, %s565_s18  }
 0x2b8   :  { %s566_s21 = smov [#allocation6]  }
 0x2b9   :  { %s379_s22 = sshll.u32 %s566_s21, 4  ;;  %s380_s22 = int_to_ptr.vmem [resolvable:$true] %s379_s22 }
 0x2ba   :  { %s531_s23 = scalar_lea.vmem %s380_s22, 256  ;;  %p536_p3 = scmp.lt.s32.totalorder %s380_s22, %s380_s22 }
 0x2bb   :  { %p532_p2 = scmp.ne.s32.totalorder %s380_s22, %s531_s23  ;;  %p537_p4 = scmp.lt.s32.totalorder %s531_s23, %s531_s23 }
 0x2bd   :  { %p538_p5 = por %p537_p4, %p536_p3 }
 0x2bf   :  { %p539_p6 = pnand %p538_p5, %p532_p2 }
 0x31e   :  { %v355_v53 = vpop.permute.xlu0 %354 }
 0x31f   :  { %360 = vst.msk [vmem:[#allocation6] sm:$0xff] %vm349_vm5, %v355_v53 }
 0x328   :  { %v357_v54 = vpop.permute.xlu0 %356 }
 0x329   :  { %361 = vst.msk [vmem:[#allocation6 + $0x8] sm:$0xff] %vm349_vm5, %v357_v54 }
 0x32a   :  { %542 = shalt.err (!%p539_p6)
}
 0x32b   :  { %s543_s9 = scalar_lea.hbm %s744_s10, 256 }
 0x32c   :  { %p544_p7 = scmp.ne.s32.totalorder %s744_s10, %s543_s9  ;;  %p547_p8 = scmp.lt.u32.totalorder %s543_s9, %s744_s10 }
 0x32e   :  { %p549_p9 = pnand %p547_p8, %p544_p7 }
 0x330   :  { %552 = shalt.err (!%p549_p9)
}
 0x331   :  { %385 = dma.vmem_to_hbm [thread:$0]  %s380_s22, 256, %s744_s10, [#allocation7], %s564_s17, %s564_s17, %s565_s18  }
 0x332   :  { %555 = dma.done.wait [#allocation4], 256  }
 0x333   :  { %556 = vsyncadd [#allocation4], 4294967040 }
 0x334   :  { %557 = dma.done.wait [#allocation7], 256  }
 0x335   :  { %558 = vsyncadd [#allocation7], 4294967040 }
 0x336   :  { %392 = vsyncpa [#allocation3], 1 }
 0x337   :  { %393 = vsyncpa [#allocation4], 1 }
 0x338   :  { %394 = vsyncpa [#allocation7], 1 }

</bundles_post_ra>
